<compile_context>
chip_gen: v6e
topology: v6e:2x2x1
jax: 0.10.0
libtpu: 0.0.40
codegen_flags: <defaults>
</compile_context>

<pallas_src>
import jax
import jax.numpy as jnp
from jax.experimental import pallas as pl
from jax.experimental.pallas import tpu as pltpu


def _make_embedding_kernel(rows_per_step):
    def kernel(ids_smem_ref, *refs):
        # refs = rows_per_step gathered (1, 1, H) table-row refs, then the output.
        del ids_smem_ref  # only consumed by the index_maps
        row_refs = refs[:rows_per_step]
        out_ref = refs[rows_per_step]
        # Coalesced store: concat rows (XLU sublane work), cast the whole
        # (rows_per_step, H) block to f32 once, single unmasked block store.
        rows = jnp.concatenate([r[0] for r in row_refs], axis=0)  # (rows_per_step, H)
        out_ref[...] = rows.astype(jnp.float32)
    return kernel


def _gather_chunk(ids_chunk, table3, rows_per_step, buffer_count):
    """One pallas_call over a chunk of ids (chunk length % rows_per_step == 0)."""
    V, _, H = table3.shape
    n_pad = ids_chunk.shape[0]
    num_steps = n_pad // rows_per_step

    def make_in_spec(k):
        # index_map gets (grid_i, *prefetch_refs); returns BLOCK indices into (V, 1, H).
        index_map = lambda i, ids_ref, k=k: (ids_ref[i * rows_per_step + k], 0, 0)
        if buffer_count is not None:
            return pl.BlockSpec((1, 1, H), index_map,
                                pipeline_mode=pl.Buffered(buffer_count))
        return pl.BlockSpec((1, 1, H), index_map)

    in_specs = [make_in_spec(k) for k in range(rows_per_step)]
    out_spec = pl.BlockSpec((rows_per_step, H), lambda i, ids_ref: (i, 0))

    # Pure bandwidth op: read n rows of the table's dtype, write n f32 rows.
    bytes_accessed = int(n_pad * H * (table3.dtype.itemsize + 4) + n_pad * 4)

    return pl.pallas_call(
        _make_embedding_kernel(rows_per_step),
        out_shape=jax.ShapeDtypeStruct((n_pad, H), jnp.float32),
        grid_spec=pltpu.PrefetchScalarGridSpec(
            num_scalar_prefetch=1,
            grid=(num_steps,),
            in_specs=in_specs,
            out_specs=out_spec,
        ),
        compiler_params=pltpu.CompilerParams(
            dimension_semantics=("parallel",),  # independent token blocks -> megacore on v7x
        ),
        cost_estimate=pl.CostEstimate(flops=0, transcendentals=0,
                                      bytes_accessed=bytes_accessed),
    )(ids_chunk, *([table3] * rows_per_step))


def embedding_forward(input_ids, embedding_table, *, rows_per_step=32,
                      buffer_count=3, max_tokens_per_call=32768):
    """Equivalent of Embedding.forward: embed_tokens(input_ids).float().

    input_ids:       integer array, any shape (e.g. (B, S))
    embedding_table: (V, H) weight (any float dtype, typically bf16)
    returns:         input_ids.shape + (H,), float32
    """
    V, H = embedding_table.shape
    orig_shape = input_ids.shape
    ids = input_ids.reshape(-1).astype(jnp.int32)
    n = int(ids.shape[0])

    # Pad token count up to a multiple of rows_per_step (pad with id 0, a valid
    # row); padded rows are sliced off at the end.
    num_blocks = int(pl.cdiv(n, rows_per_step))
    n_pad = num_blocks * rows_per_step
    if n_pad != n:
        ids = jnp.concatenate([ids, jnp.zeros((n_pad - n,), jnp.int32)])

    # (V, H) -> (V, 1, H): the gathered (1, 1, H) block keeps its trailing two
    # dims equal to the full array dims, satisfying TPU block-shape rules.
    table3 = embedding_table.reshape(V, 1, H)

    # SMEM guard: chunk the prefetched id vector across multiple pallas_calls.
    chunk = max(rows_per_step,
                (max_tokens_per_call // rows_per_step) * rows_per_step)

    outs = []
    use_buffering = buffer_count
    for start in range(0, n_pad, chunk):
        ids_chunk = ids[start:start + chunk]
        if use_buffering is not None:
            try:
                out_chunk = _gather_chunk(ids_chunk, table3, rows_per_step,
                                          use_buffering)
            except Exception:
                # Fallback if this JAX build rejects pipeline_mode=pl.Buffered.
                use_buffering = None
                out_chunk = _gather_chunk(ids_chunk, table3, rows_per_step, None)
        else:
            out_chunk = _gather_chunk(ids_chunk, table3, rows_per_step, None)
        outs.append(out_chunk)

    out_padded = outs[0] if len(outs) == 1 else jnp.concatenate(outs, axis=0)
    return out_padded[:n].reshape(*orig_shape, H)


if __name__ == "__main__":
    key = jax.random.PRNGKey(0)
    k_tbl, k_ids = jax.random.split(key)

    # Small shapes consistent with the module: batch=2, seq=8, vocab=256, hidden=128.
    B, S, V, H = 2, 8, 256, 128
    embedding_table = jax.random.normal(k_tbl, (V, H), dtype=jnp.bfloat16)
    input_ids = jax.random.randint(k_ids, (B, S), 0, V, dtype=jnp.int32)

    out = embedding_forward(input_ids, embedding_table)
    out = jax.block_until_ready(out)

    # Reference: plain-JAX gather + .float() (bit-exact: gather then exact bf16->f32 cast).
    ref = embedding_table[input_ids].astype(jnp.float32)
    assert out.shape == (B, S, H)
    assert out.dtype == jnp.float32
    assert bool(jnp.all(out == ref))

    print("KERNEL_OK")
</pallas_src>

<mosaic_0001>
module attributes {stable_mosaic.version = 11 : i64} {
  func.func @kernel(%arg0: i32, %arg1: memref<32xi32, #tpu.memory_space<smem>>, %arg2: memref<1x1x128xbf16, #tpu.memory_space<vmem>>, %arg3: memref<1x1x128xbf16, #tpu.memory_space<vmem>>, %arg4: memref<1x1x128xbf16, #tpu.memory_space<vmem>>, %arg5: memref<1x1x128xbf16, #tpu.memory_space<vmem>>, %arg6: memref<1x1x128xbf16, #tpu.memory_space<vmem>>, %arg7: memref<1x1x128xbf16, #tpu.memory_space<vmem>>, %arg8: memref<1x1x128xbf16, #tpu.memory_space<vmem>>, %arg9: memref<1x1x128xbf16, #tpu.memory_space<vmem>>, %arg10: memref<1x1x128xbf16, #tpu.memory_space<vmem>>, %arg11: memref<1x1x128xbf16, #tpu.memory_space<vmem>>, %arg12: memref<1x1x128xbf16, #tpu.memory_space<vmem>>, %arg13: memref<1x1x128xbf16, #tpu.memory_space<vmem>>, %arg14: memref<1x1x128xbf16, #tpu.memory_space<vmem>>, %arg15: memref<1x1x128xbf16, #tpu.memory_space<vmem>>, %arg16: memref<1x1x128xbf16, #tpu.memory_space<vmem>>, %arg17: memref<1x1x128xbf16, #tpu.memory_space<vmem>>, %arg18: memref<1x1x128xbf16, #tpu.memory_space<vmem>>, %arg19: memref<1x1x128xbf16, #tpu.memory_space<vmem>>, %arg20: memref<1x1x128xbf16, #tpu.memory_space<vmem>>, %arg21: memref<1x1x128xbf16, #tpu.memory_space<vmem>>, %arg22: memref<1x1x128xbf16, #tpu.memory_space<vmem>>, %arg23: memref<1x1x128xbf16, #tpu.memory_space<vmem>>, %arg24: memref<1x1x128xbf16, #tpu.memory_space<vmem>>, %arg25: memref<1x1x128xbf16, #tpu.memory_space<vmem>>, %arg26: memref<1x1x128xbf16, #tpu.memory_space<vmem>>, %arg27: memref<1x1x128xbf16, #tpu.memory_space<vmem>>, %arg28: memref<1x1x128xbf16, #tpu.memory_space<vmem>>, %arg29: memref<1x1x128xbf16, #tpu.memory_space<vmem>>, %arg30: memref<1x1x128xbf16, #tpu.memory_space<vmem>>, %arg31: memref<1x1x128xbf16, #tpu.memory_space<vmem>>, %arg32: memref<1x1x128xbf16, #tpu.memory_space<vmem>>, %arg33: memref<1x1x128xbf16, #tpu.memory_space<vmem>>, %arg34: memref<32x128xf32, #tpu.memory_space<vmem>>) attributes {dimension_semantics = [#tpu.dimension_semantics<parallel>], iteration_bounds = array<i64: 1>, scalar_prefetch = 1 : i64, scratch_operands = 0 : i64, tpu.core_type = #tpu.core_type<tc>, window_params = [{transform_indices = @transform_0, window_bounds = array<i64: 1, 1, 128>}, {transform_indices = @transform_1, window_bounds = array<i64: 1, 1, 128>}, {transform_indices = @transform_2, window_bounds = array<i64: 1, 1, 128>}, {transform_indices = @transform_3, window_bounds = array<i64: 1, 1, 128>}, {transform_indices = @transform_4, window_bounds = array<i64: 1, 1, 128>}, {transform_indices = @transform_5, window_bounds = array<i64: 1, 1, 128>}, {transform_indices = @transform_6, window_bounds = array<i64: 1, 1, 128>}, {transform_indices = @transform_7, window_bounds = array<i64: 1, 1, 128>}, {transform_indices = @transform_8, window_bounds = array<i64: 1, 1, 128>}, {transform_indices = @transform_9, window_bounds = array<i64: 1, 1, 128>}, {transform_indices = @transform_10, window_bounds = array<i64: 1, 1, 128>}, {transform_indices = @transform_11, window_bounds = array<i64: 1, 1, 128>}, {transform_indices = @transform_12, window_bounds = array<i64: 1, 1, 128>}, {transform_indices = @transform_13, window_bounds = array<i64: 1, 1, 128>}, {transform_indices = @transform_14, window_bounds = array<i64: 1, 1, 128>}, {transform_indices = @transform_15, window_bounds = array<i64: 1, 1, 128>}, {transform_indices = @transform_16, window_bounds = array<i64: 1, 1, 128>}, {transform_indices = @transform_17, window_bounds = array<i64: 1, 1, 128>}, {transform_indices = @transform_18, window_bounds = array<i64: 1, 1, 128>}, {transform_indices = @transform_19, window_bounds = array<i64: 1, 1, 128>}, {transform_indices = @transform_20, window_bounds = array<i64: 1, 1, 128>}, {transform_indices = @transform_21, window_bounds = array<i64: 1, 1, 128>}, {transform_indices = @transform_22, window_bounds = array<i64: 1, 1, 128>}, {transform_indices = @transform_23, window_bounds = array<i64: 1, 1, 128>}, {transform_indices = @transform_24, window_bounds = array<i64: 1, 1, 128>}, {transform_indices = @transform_25, window_bounds = array<i64: 1, 1, 128>}, {transform_indices = @transform_26, window_bounds = array<i64: 1, 1, 128>}, {transform_indices = @transform_27, window_bounds = array<i64: 1, 1, 128>}, {transform_indices = @transform_28, window_bounds = array<i64: 1, 1, 128>}, {transform_indices = @transform_29, window_bounds = array<i64: 1, 1, 128>}, {transform_indices = @transform_30, window_bounds = array<i64: 1, 1, 128>}, {transform_indices = @transform_31, window_bounds = array<i64: 1, 1, 128>}, {transform_indices = @transform_32, window_bounds = array<i64: 32, 128>}]} {
    %c0 = arith.constant 0 : index
    %c0_0 = arith.constant 0 : index
    %c0_1 = arith.constant 0 : index
    %0 = vector.load %arg2[%c0, %c0_0, %c0_1] : memref<1x1x128xbf16, #tpu.memory_space<vmem>>, vector<1x1x128xbf16>
    %1 = vector.shape_cast %0 : vector<1x1x128xbf16> to vector<1x128xbf16>
    %c0_2 = arith.constant 0 : index
    %c0_3 = arith.constant 0 : index
    %c0_4 = arith.constant 0 : index
    %2 = vector.load %arg3[%c0_2, %c0_3, %c0_4] : memref<1x1x128xbf16, #tpu.memory_space<vmem>>, vector<1x1x128xbf16>
    %3 = vector.shape_cast %2 : vector<1x1x128xbf16> to vector<1x128xbf16>
    %c0_5 = arith.constant 0 : index
    %c0_6 = arith.constant 0 : index
    %c0_7 = arith.constant 0 : index
    %4 = vector.load %arg4[%c0_5, %c0_6, %c0_7] : memref<1x1x128xbf16, #tpu.memory_space<vmem>>, vector<1x1x128xbf16>
    %5 = vector.shape_cast %4 : vector<1x1x128xbf16> to vector<1x128xbf16>
    %c0_8 = arith.constant 0 : index
    %c0_9 = arith.constant 0 : index
    %c0_10 = arith.constant 0 : index
    %6 = vector.load %arg5[%c0_8, %c0_9, %c0_10] : memref<1x1x128xbf16, #tpu.memory_space<vmem>>, vector<1x1x128xbf16>
    %7 = vector.shape_cast %6 : vector<1x1x128xbf16> to vector<1x128xbf16>
    %c0_11 = arith.constant 0 : index
    %c0_12 = arith.constant 0 : index
    %c0_13 = arith.constant 0 : index
    %8 = vector.load %arg6[%c0_11, %c0_12, %c0_13] : memref<1x1x128xbf16, #tpu.memory_space<vmem>>, vector<1x1x128xbf16>
    %9 = vector.shape_cast %8 : vector<1x1x128xbf16> to vector<1x128xbf16>
    %c0_14 = arith.constant 0 : index
    %c0_15 = arith.constant 0 : index
    %c0_16 = arith.constant 0 : index
    %10 = vector.load %arg7[%c0_14, %c0_15, %c0_16] : memref<1x1x128xbf16, #tpu.memory_space<vmem>>, vector<1x1x128xbf16>
    %11 = vector.shape_cast %10 : vector<1x1x128xbf16> to vector<1x128xbf16>
    %c0_17 = arith.constant 0 : index
    %c0_18 = arith.constant 0 : index
    %c0_19 = arith.constant 0 : index
    %12 = vector.load %arg8[%c0_17, %c0_18, %c0_19] : memref<1x1x128xbf16, #tpu.memory_space<vmem>>, vector<1x1x128xbf16>
    %13 = vector.shape_cast %12 : vector<1x1x128xbf16> to vector<1x128xbf16>
    %c0_20 = arith.constant 0 : index
    %c0_21 = arith.constant 0 : index
    %c0_22 = arith.constant 0 : index
    %14 = vector.load %arg9[%c0_20, %c0_21, %c0_22] : memref<1x1x128xbf16, #tpu.memory_space<vmem>>, vector<1x1x128xbf16>
    %15 = vector.shape_cast %14 : vector<1x1x128xbf16> to vector<1x128xbf16>
    %c0_23 = arith.constant 0 : index
    %c0_24 = arith.constant 0 : index
    %c0_25 = arith.constant 0 : index
    %16 = vector.load %arg10[%c0_23, %c0_24, %c0_25] : memref<1x1x128xbf16, #tpu.memory_space<vmem>>, vector<1x1x128xbf16>
    %17 = vector.shape_cast %16 : vector<1x1x128xbf16> to vector<1x128xbf16>
    %c0_26 = arith.constant 0 : index
    %c0_27 = arith.constant 0 : index
    %c0_28 = arith.constant 0 : index
    %18 = vector.load %arg11[%c0_26, %c0_27, %c0_28] : memref<1x1x128xbf16, #tpu.memory_space<vmem>>, vector<1x1x128xbf16>
    %19 = vector.shape_cast %18 : vector<1x1x128xbf16> to vector<1x128xbf16>
    %c0_29 = arith.constant 0 : index
    %c0_30 = arith.constant 0 : index
    %c0_31 = arith.constant 0 : index
    %20 = vector.load %arg12[%c0_29, %c0_30, %c0_31] : memref<1x1x128xbf16, #tpu.memory_space<vmem>>, vector<1x1x128xbf16>
    %21 = vector.shape_cast %20 : vector<1x1x128xbf16> to vector<1x128xbf16>
    %c0_32 = arith.constant 0 : index
    %c0_33 = arith.constant 0 : index
    %c0_34 = arith.constant 0 : index
    %22 = vector.load %arg13[%c0_32, %c0_33, %c0_34] : memref<1x1x128xbf16, #tpu.memory_space<vmem>>, vector<1x1x128xbf16>
    %23 = vector.shape_cast %22 : vector<1x1x128xbf16> to vector<1x128xbf16>
    %c0_35 = arith.constant 0 : index
    %c0_36 = arith.constant 0 : index
    %c0_37 = arith.constant 0 : index
    %24 = vector.load %arg14[%c0_35, %c0_36, %c0_37] : memref<1x1x128xbf16, #tpu.memory_space<vmem>>, vector<1x1x128xbf16>
    %25 = vector.shape_cast %24 : vector<1x1x128xbf16> to vector<1x128xbf16>
    %c0_38 = arith.constant 0 : index
    %c0_39 = arith.constant 0 : index
    %c0_40 = arith.constant 0 : index
    %26 = vector.load %arg15[%c0_38, %c0_39, %c0_40] : memref<1x1x128xbf16, #tpu.memory_space<vmem>>, vector<1x1x128xbf16>
    %27 = vector.shape_cast %26 : vector<1x1x128xbf16> to vector<1x128xbf16>
    %c0_41 = arith.constant 0 : index
    %c0_42 = arith.constant 0 : index
    %c0_43 = arith.constant 0 : index
    %28 = vector.load %arg16[%c0_41, %c0_42, %c0_43] : memref<1x1x128xbf16, #tpu.memory_space<vmem>>, vector<1x1x128xbf16>
    %29 = vector.shape_cast %28 : vector<1x1x128xbf16> to vector<1x128xbf16>
    %c0_44 = arith.constant 0 : index
    %c0_45 = arith.constant 0 : index
    %c0_46 = arith.constant 0 : index
    %30 = vector.load %arg17[%c0_44, %c0_45, %c0_46] : memref<1x1x128xbf16, #tpu.memory_space<vmem>>, vector<1x1x128xbf16>
    %31 = vector.shape_cast %30 : vector<1x1x128xbf16> to vector<1x128xbf16>
    %c0_47 = arith.constant 0 : index
    %c0_48 = arith.constant 0 : index
    %c0_49 = arith.constant 0 : index
    %32 = vector.load %arg18[%c0_47, %c0_48, %c0_49] : memref<1x1x128xbf16, #tpu.memory_space<vmem>>, vector<1x1x128xbf16>
    %33 = vector.shape_cast %32 : vector<1x1x128xbf16> to vector<1x128xbf16>
    %c0_50 = arith.constant 0 : index
    %c0_51 = arith.constant 0 : index
    %c0_52 = arith.constant 0 : index
    %34 = vector.load %arg19[%c0_50, %c0_51, %c0_52] : memref<1x1x128xbf16, #tpu.memory_space<vmem>>, vector<1x1x128xbf16>
    %35 = vector.shape_cast %34 : vector<1x1x128xbf16> to vector<1x128xbf16>
    %c0_53 = arith.constant 0 : index
    %c0_54 = arith.constant 0 : index
    %c0_55 = arith.constant 0 : index
    %36 = vector.load %arg20[%c0_53, %c0_54, %c0_55] : memref<1x1x128xbf16, #tpu.memory_space<vmem>>, vector<1x1x128xbf16>
    %37 = vector.shape_cast %36 : vector<1x1x128xbf16> to vector<1x128xbf16>
    %c0_56 = arith.constant 0 : index
    %c0_57 = arith.constant 0 : index
    %c0_58 = arith.constant 0 : index
    %38 = vector.load %arg21[%c0_56, %c0_57, %c0_58] : memref<1x1x128xbf16, #tpu.memory_space<vmem>>, vector<1x1x128xbf16>
    %39 = vector.shape_cast %38 : vector<1x1x128xbf16> to vector<1x128xbf16>
    %c0_59 = arith.constant 0 : index
    %c0_60 = arith.constant 0 : index
    %c0_61 = arith.constant 0 : index
    %40 = vector.load %arg22[%c0_59, %c0_60, %c0_61] : memref<1x1x128xbf16, #tpu.memory_space<vmem>>, vector<1x1x128xbf16>
    %41 = vector.shape_cast %40 : vector<1x1x128xbf16> to vector<1x128xbf16>
    %c0_62 = arith.constant 0 : index
    %c0_63 = arith.constant 0 : index
    %c0_64 = arith.constant 0 : index
    %42 = vector.load %arg23[%c0_62, %c0_63, %c0_64] : memref<1x1x128xbf16, #tpu.memory_space<vmem>>, vector<1x1x128xbf16>
    %43 = vector.shape_cast %42 : vector<1x1x128xbf16> to vector<1x128xbf16>
    %c0_65 = arith.constant 0 : index
    %c0_66 = arith.constant 0 : index
    %c0_67 = arith.constant 0 : index
    %44 = vector.load %arg24[%c0_65, %c0_66, %c0_67] : memref<1x1x128xbf16, #tpu.memory_space<vmem>>, vector<1x1x128xbf16>
    %45 = vector.shape_cast %44 : vector<1x1x128xbf16> to vector<1x128xbf16>
    %c0_68 = arith.constant 0 : index
    %c0_69 = arith.constant 0 : index
    %c0_70 = arith.constant 0 : index
    %46 = vector.load %arg25[%c0_68, %c0_69, %c0_70] : memref<1x1x128xbf16, #tpu.memory_space<vmem>>, vector<1x1x128xbf16>
    %47 = vector.shape_cast %46 : vector<1x1x128xbf16> to vector<1x128xbf16>
    %c0_71 = arith.constant 0 : index
    %c0_72 = arith.constant 0 : index
    %c0_73 = arith.constant 0 : index
    %48 = vector.load %arg26[%c0_71, %c0_72, %c0_73] : memref<1x1x128xbf16, #tpu.memory_space<vmem>>, vector<1x1x128xbf16>
    %49 = vector.shape_cast %48 : vector<1x1x128xbf16> to vector<1x128xbf16>
    %c0_74 = arith.constant 0 : index
    %c0_75 = arith.constant 0 : index
    %c0_76 = arith.constant 0 : index
    %50 = vector.load %arg27[%c0_74, %c0_75, %c0_76] : memref<1x1x128xbf16, #tpu.memory_space<vmem>>, vector<1x1x128xbf16>
    %51 = vector.shape_cast %50 : vector<1x1x128xbf16> to vector<1x128xbf16>
    %c0_77 = arith.constant 0 : index
    %c0_78 = arith.constant 0 : index
    %c0_79 = arith.constant 0 : index
    %52 = vector.load %arg28[%c0_77, %c0_78, %c0_79] : memref<1x1x128xbf16, #tpu.memory_space<vmem>>, vector<1x1x128xbf16>
    %53 = vector.shape_cast %52 : vector<1x1x128xbf16> to vector<1x128xbf16>
    %c0_80 = arith.constant 0 : index
    %c0_81 = arith.constant 0 : index
    %c0_82 = arith.constant 0 : index
    %54 = vector.load %arg29[%c0_80, %c0_81, %c0_82] : memref<1x1x128xbf16, #tpu.memory_space<vmem>>, vector<1x1x128xbf16>
    %55 = vector.shape_cast %54 : vector<1x1x128xbf16> to vector<1x128xbf16>
    %c0_83 = arith.constant 0 : index
    %c0_84 = arith.constant 0 : index
    %c0_85 = arith.constant 0 : index
    %56 = vector.load %arg30[%c0_83, %c0_84, %c0_85] : memref<1x1x128xbf16, #tpu.memory_space<vmem>>, vector<1x1x128xbf16>
    %57 = vector.shape_cast %56 : vector<1x1x128xbf16> to vector<1x128xbf16>
    %c0_86 = arith.constant 0 : index
    %c0_87 = arith.constant 0 : index
    %c0_88 = arith.constant 0 : index
    %58 = vector.load %arg31[%c0_86, %c0_87, %c0_88] : memref<1x1x128xbf16, #tpu.memory_space<vmem>>, vector<1x1x128xbf16>
    %59 = vector.shape_cast %58 : vector<1x1x128xbf16> to vector<1x128xbf16>
    %c0_89 = arith.constant 0 : index
    %c0_90 = arith.constant 0 : index
    %c0_91 = arith.constant 0 : index
    %60 = vector.load %arg32[%c0_89, %c0_90, %c0_91] : memref<1x1x128xbf16, #tpu.memory_space<vmem>>, vector<1x1x128xbf16>
    %61 = vector.shape_cast %60 : vector<1x1x128xbf16> to vector<1x128xbf16>
    %c0_92 = arith.constant 0 : index
    %c0_93 = arith.constant 0 : index
    %c0_94 = arith.constant 0 : index
    %62 = vector.load %arg33[%c0_92, %c0_93, %c0_94] : memref<1x1x128xbf16, #tpu.memory_space<vmem>>, vector<1x1x128xbf16>
    %63 = vector.shape_cast %62 : vector<1x1x128xbf16> to vector<1x128xbf16>
    %64 = tpu.concatenate %1, %3, %5, %7, %9, %11, %13, %15, %17, %19, %21, %23, %25, %27, %29, %31 in 0 : vector<1x128xbf16>, vector<1x128xbf16>, vector<1x128xbf16>, vector<1x128xbf16>, vector<1x128xbf16>, vector<1x128xbf16>, vector<1x128xbf16>, vector<1x128xbf16>, vector<1x128xbf16>, vector<1x128xbf16>, vector<1x128xbf16>, vector<1x128xbf16>, vector<1x128xbf16>, vector<1x128xbf16>, vector<1x128xbf16>, vector<1x128xbf16> -> vector<16x128xbf16>
    %65 = tpu.concatenate %33, %35, %37, %39, %41, %43, %45, %47, %49, %51, %53, %55, %57, %59, %61, %63 in 0 : vector<1x128xbf16>, vector<1x128xbf16>, vector<1x128xbf16>, vector<1x128xbf16>, vector<1x128xbf16>, vector<1x128xbf16>, vector<1x128xbf16>, vector<1x128xbf16>, vector<1x128xbf16>, vector<1x128xbf16>, vector<1x128xbf16>, vector<1x128xbf16>, vector<1x128xbf16>, vector<1x128xbf16>, vector<1x128xbf16>, vector<1x128xbf16> -> vector<16x128xbf16>
    %66 = tpu.concatenate %64, %65 in 0 : vector<16x128xbf16>, vector<16x128xbf16> -> vector<32x128xbf16>
    %67 = arith.extf %66 : vector<32x128xbf16> to vector<32x128xf32>
    %c0_95 = arith.constant 0 : index
    %c0_96 = arith.constant 0 : index
    %68 = vector.load %arg34[%c0_95, %c0_96] : memref<32x128xf32, #tpu.memory_space<vmem>>, vector<32x128xf32>
    tpu.vector_store %arg34[%c0_95, %c0_96], %67 {strides = array<i32>} : memref<32x128xf32, #tpu.memory_space<vmem>>, vector<32x128xf32>,
    return
  }
  func.func @transform_0(%arg0: i32, %arg1: memref<32xi32, #tpu.memory_space<smem>>) -> (i32, i32, i32) {
    %c32_i32 = arith.constant 32 : i32
    %0 = arith.muli %arg0, %c32_i32 : i32
    %c0_i32 = arith.constant 0 : i32
    %1 = arith.addi %0, %c0_i32 : i32
    %2 = arith.index_cast %1 : i32 to index
    %3 = memref.load %arg1[%2] : memref<32xi32, #tpu.memory_space<smem>>
    %c0_i32_0 = arith.constant 0 : i32
    %c0_i32_1 = arith.constant 0 : i32
    %c0_i32_2 = arith.constant 0 : i32
    return %3, %c0_i32_0, %c0_i32_1 : i32, i32, i32
  }
  func.func @transform_1(%arg0: i32, %arg1: memref<32xi32, #tpu.memory_space<smem>>) -> (i32, i32, i32) {
    %c32_i32 = arith.constant 32 : i32
    %0 = arith.muli %arg0, %c32_i32 : i32
    %c1_i32 = arith.constant 1 : i32
    %1 = arith.addi %0, %c1_i32 : i32
    %2 = arith.index_cast %1 : i32 to index
    %3 = memref.load %arg1[%2] : memref<32xi32, #tpu.memory_space<smem>>
    %c0_i32 = arith.constant 0 : i32
    %c0_i32_0 = arith.constant 0 : i32
    %c0_i32_1 = arith.constant 0 : i32
    return %3, %c0_i32, %c0_i32_0 : i32, i32, i32
  }
  func.func @transform_2(%arg0: i32, %arg1: memref<32xi32, #tpu.memory_space<smem>>) -> (i32, i32, i32) {
    %c32_i32 = arith.constant 32 : i32
    %0 = arith.muli %arg0, %c32_i32 : i32
    %c2_i32 = arith.constant 2 : i32
    %1 = arith.addi %0, %c2_i32 : i32
    %2 = arith.index_cast %1 : i32 to index
    %3 = memref.load %arg1[%2] : memref<32xi32, #tpu.memory_space<smem>>
    %c0_i32 = arith.constant 0 : i32
    %c0_i32_0 = arith.constant 0 : i32
    %c0_i32_1 = arith.constant 0 : i32
    return %3, %c0_i32, %c0_i32_0 : i32, i32, i32
  }
  func.func @transform_3(%arg0: i32, %arg1: memref<32xi32, #tpu.memory_space<smem>>) -> (i32, i32, i32) {
    %c32_i32 = arith.constant 32 : i32
    %0 = arith.muli %arg0, %c32_i32 : i32
    %c3_i32 = arith.constant 3 : i32
    %1 = arith.addi %0, %c3_i32 : i32
    %2 = arith.index_cast %1 : i32 to index
    %3 = memref.load %arg1[%2] : memref<32xi32, #tpu.memory_space<smem>>
    %c0_i32 = arith.constant 0 : i32
    %c0_i32_0 = arith.constant 0 : i32
    %c0_i32_1 = arith.constant 0 : i32
    return %3, %c0_i32, %c0_i32_0 : i32, i32, i32
  }
  func.func @transform_4(%arg0: i32, %arg1: memref<32xi32, #tpu.memory_space<smem>>) -> (i32, i32, i32) {
    %c32_i32 = arith.constant 32 : i32
    %0 = arith.muli %arg0, %c32_i32 : i32
    %c4_i32 = arith.constant 4 : i32
    %1 = arith.addi %0, %c4_i32 : i32
    %2 = arith.index_cast %1 : i32 to index
    %3 = memref.load %arg1[%2] : memref<32xi32, #tpu.memory_space<smem>>
    %c0_i32 = arith.constant 0 : i32
    %c0_i32_0 = arith.constant 0 : i32
    %c0_i32_1 = arith.constant 0 : i32
    return %3, %c0_i32, %c0_i32_0 : i32, i32, i32
  }
  func.func @transform_5(%arg0: i32, %arg1: memref<32xi32, #tpu.memory_space<smem>>) -> (i32, i32, i32) {
    %c32_i32 = arith.constant 32 : i32
    %0 = arith.muli %arg0, %c32_i32 : i32
    %c5_i32 = arith.constant 5 : i32
    %1 = arith.addi %0, %c5_i32 : i32
    %2 = arith.index_cast %1 : i32 to index
    %3 = memref.load %arg1[%2] : memref<32xi32, #tpu.memory_space<smem>>
    %c0_i32 = arith.constant 0 : i32
    %c0_i32_0 = arith.constant 0 : i32
    %c0_i32_1 = arith.constant 0 : i32
    return %3, %c0_i32, %c0_i32_0 : i32, i32, i32
  }
  func.func @transform_6(%arg0: i32, %arg1: memref<32xi32, #tpu.memory_space<smem>>) -> (i32, i32, i32) {
    %c32_i32 = arith.constant 32 : i32
    %0 = arith.muli %arg0, %c32_i32 : i32
    %c6_i32 = arith.constant 6 : i32
    %1 = arith.addi %0, %c6_i32 : i32
    %2 = arith.index_cast %1 : i32 to index
    %3 = memref.load %arg1[%2] : memref<32xi32, #tpu.memory_space<smem>>
    %c0_i32 = arith.constant 0 : i32
    %c0_i32_0 = arith.constant 0 : i32
    %c0_i32_1 = arith.constant 0 : i32
    return %3, %c0_i32, %c0_i32_0 : i32, i32, i32
  }
  func.func @transform_7(%arg0: i32, %arg1: memref<32xi32, #tpu.memory_space<smem>>) -> (i32, i32, i32) {
    %c32_i32 = arith.constant 32 : i32
    %0 = arith.muli %arg0, %c32_i32 : i32
    %c7_i32 = arith.constant 7 : i32
    %1 = arith.addi %0, %c7_i32 : i32
    %2 = arith.index_cast %1 : i32 to index
    %3 = memref.load %arg1[%2] : memref<32xi32, #tpu.memory_space<smem>>
    %c0_i32 = arith.constant 0 : i32
    %c0_i32_0 = arith.constant 0 : i32
    %c0_i32_1 = arith.constant 0 : i32
    return %3, %c0_i32, %c0_i32_0 : i32, i32, i32
  }
  func.func @transform_8(%arg0: i32, %arg1: memref<32xi32, #tpu.memory_space<smem>>) -> (i32, i32, i32) {
    %c32_i32 = arith.constant 32 : i32
    %0 = arith.muli %arg0, %c32_i32 : i32
    %c8_i32 = arith.constant 8 : i32
    %1 = arith.addi %0, %c8_i32 : i32
    %2 = arith.index_cast %1 : i32 to index
    %3 = memref.load %arg1[%2] : memref<32xi32, #tpu.memory_space<smem>>
    %c0_i32 = arith.constant 0 : i32
    %c0_i32_0 = arith.constant 0 : i32
    %c0_i32_1 = arith.constant 0 : i32
    return %3, %c0_i32, %c0_i32_0 : i32, i32, i32
  }
  func.func @transform_9(%arg0: i32, %arg1: memref<32xi32, #tpu.memory_space<smem>>) -> (i32, i32, i32) {
    %c32_i32 = arith.constant 32 : i32
    %0 = arith.muli %arg0, %c32_i32 : i32
    %c9_i32 = arith.constant 9 : i32
    %1 = arith.addi %0, %c9_i32 : i32
    %2 = arith.index_cast %1 : i32 to index
    %3 = memref.load %arg1[%2] : memref<32xi32, #tpu.memory_space<smem>>
    %c0_i32 = arith.constant 0 : i32
    %c0_i32_0 = arith.constant 0 : i32
    %c0_i32_1 = arith.constant 0 : i32
    return %3, %c0_i32, %c0_i32_0 : i32, i32, i32
  }
  func.func @transform_10(%arg0: i32, %arg1: memref<32xi32, #tpu.memory_space<smem>>) -> (i32, i32, i32) {
    %c32_i32 = arith.constant 32 : i32
    %0 = arith.muli %arg0, %c32_i32 : i32
    %c10_i32 = arith.constant 10 : i32
    %1 = arith.addi %0, %c10_i32 : i32
    %2 = arith.index_cast %1 : i32 to index
    %3 = memref.load %arg1[%2] : memref<32xi32, #tpu.memory_space<smem>>
    %c0_i32 = arith.constant 0 : i32
    %c0_i32_0 = arith.constant 0 : i32
    %c0_i32_1 = arith.constant 0 : i32
    return %3, %c0_i32, %c0_i32_0 : i32, i32, i32
  }
  func.func @transform_11(%arg0: i32, %arg1: memref<32xi32, #tpu.memory_space<smem>>) -> (i32, i32, i32) {
    %c32_i32 = arith.constant 32 : i32
    %0 = arith.muli %arg0, %c32_i32 : i32
    %c11_i32 = arith.constant 11 : i32
    %1 = arith.addi %0, %c11_i32 : i32
    %2 = arith.index_cast %1 : i32 to index
    %3 = memref.load %arg1[%2] : memref<32xi32, #tpu.memory_space<smem>>
    %c0_i32 = arith.constant 0 : i32
    %c0_i32_0 = arith.constant 0 : i32
    %c0_i32_1 = arith.constant 0 : i32
    return %3, %c0_i32, %c0_i32_0 : i32, i32, i32
  }
  func.func @transform_12(%arg0: i32, %arg1: memref<32xi32, #tpu.memory_space<smem>>) -> (i32, i32, i32) {
    %c32_i32 = arith.constant 32 : i32
    %0 = arith.muli %arg0, %c32_i32 : i32
    %c12_i32 = arith.constant 12 : i32
    %1 = arith.addi %0, %c12_i32 : i32
    %2 = arith.index_cast %1 : i32 to index
    %3 = memref.load %arg1[%2] : memref<32xi32, #tpu.memory_space<smem>>
    %c0_i32 = arith.constant 0 : i32
    %c0_i32_0 = arith.constant 0 : i32
    %c0_i32_1 = arith.constant 0 : i32
    return %3, %c0_i32, %c0_i32_0 : i32, i32, i32
  }
  func.func @transform_13(%arg0: i32, %arg1: memref<32xi32, #tpu.memory_space<smem>>) -> (i32, i32, i32) {
    %c32_i32 = arith.constant 32 : i32
    %0 = arith.muli %arg0, %c32_i32 : i32
    %c13_i32 = arith.constant 13 : i32
    %1 = arith.addi %0, %c13_i32 : i32
    %2 = arith.index_cast %1 : i32 to index
    %3 = memref.load %arg1[%2] : memref<32xi32, #tpu.memory_space<smem>>
    %c0_i32 = arith.constant 0 : i32
    %c0_i32_0 = arith.constant 0 : i32
    %c0_i32_1 = arith.constant 0 : i32
    return %3, %c0_i32, %c0_i32_0 : i32, i32, i32
  }
  func.func @transform_14(%arg0: i32, %arg1: memref<32xi32, #tpu.memory_space<smem>>) -> (i32, i32, i32) {
    %c32_i32 = arith.constant 32 : i32
    %0 = arith.muli %arg0, %c32_i32 : i32
    %c14_i32 = arith.constant 14 : i32
    %1 = arith.addi %0, %c14_i32 : i32
    %2 = arith.index_cast %1 : i32 to index
    %3 = memref.load %arg1[%2] : memref<32xi32, #tpu.memory_space<smem>>
    %c0_i32 = arith.constant 0 : i32
    %c0_i32_0 = arith.constant 0 : i32
    %c0_i32_1 = arith.constant 0 : i32
    return %3, %c0_i32, %c0_i32_0 : i32, i32, i32
  }
  func.func @transform_15(%arg0: i32, %arg1: memref<32xi32, #tpu.memory_space<smem>>) -> (i32, i32, i32) {
    %c32_i32 = arith.constant 32 : i32
    %0 = arith.muli %arg0, %c32_i32 : i32
    %c15_i32 = arith.constant 15 : i32
    %1 = arith.addi %0, %c15_i32 : i32
    %2 = arith.index_cast %1 : i32 to index
    %3 = memref.load %arg1[%2] : memref<32xi32, #tpu.memory_space<smem>>
    %c0_i32 = arith.constant 0 : i32
    %c0_i32_0 = arith.constant 0 : i32
    %c0_i32_1 = arith.constant 0 : i32
    return %3, %c0_i32, %c0_i32_0 : i32, i32, i32
  }
  func.func @transform_16(%arg0: i32, %arg1: memref<32xi32, #tpu.memory_space<smem>>) -> (i32, i32, i32) {
    %c32_i32 = arith.constant 32 : i32
    %0 = arith.muli %arg0, %c32_i32 : i32
    %c16_i32 = arith.constant 16 : i32
    %1 = arith.addi %0, %c16_i32 : i32
    %2 = arith.index_cast %1 : i32 to index
    %3 = memref.load %arg1[%2] : memref<32xi32, #tpu.memory_space<smem>>
    %c0_i32 = arith.constant 0 : i32
    %c0_i32_0 = arith.constant 0 : i32
    %c0_i32_1 = arith.constant 0 : i32
    return %3, %c0_i32, %c0_i32_0 : i32, i32, i32
  }
  func.func @transform_17(%arg0: i32, %arg1: memref<32xi32, #tpu.memory_space<smem>>) -> (i32, i32, i32) {
    %c32_i32 = arith.constant 32 : i32
    %0 = arith.muli %arg0, %c32_i32 : i32
    %c17_i32 = arith.constant 17 : i32
    %1 = arith.addi %0, %c17_i32 : i32
    %2 = arith.index_cast %1 : i32 to index
    %3 = memref.load %arg1[%2] : memref<32xi32, #tpu.memory_space<smem>>
    %c0_i32 = arith.constant 0 : i32
    %c0_i32_0 = arith.constant 0 : i32
    %c0_i32_1 = arith.constant 0 : i32
    return %3, %c0_i32, %c0_i32_0 : i32, i32, i32
  }
  func.func @transform_18(%arg0: i32, %arg1: memref<32xi32, #tpu.memory_space<smem>>) -> (i32, i32, i32) {
    %c32_i32 = arith.constant 32 : i32
    %0 = arith.muli %arg0, %c32_i32 : i32
    %c18_i32 = arith.constant 18 : i32
    %1 = arith.addi %0, %c18_i32 : i32
    %2 = arith.index_cast %1 : i32 to index
    %3 = memref.load %arg1[%2] : memref<32xi32, #tpu.memory_space<smem>>
    %c0_i32 = arith.constant 0 : i32
    %c0_i32_0 = arith.constant 0 : i32
    %c0_i32_1 = arith.constant 0 : i32
    return %3, %c0_i32, %c0_i32_0 : i32, i32, i32
  }
  func.func @transform_19(%arg0: i32, %arg1: memref<32xi32, #tpu.memory_space<smem>>) -> (i32, i32, i32) {
    %c32_i32 = arith.constant 32 : i32
    %0 = arith.muli %arg0, %c32_i32 : i32
    %c19_i32 = arith.constant 19 : i32
    %1 = arith.addi %0, %c19_i32 : i32
    %2 = arith.index_cast %1 : i32 to index
    %3 = memref.load %arg1[%2] : memref<32xi32, #tpu.memory_space<smem>>
    %c0_i32 = arith.constant 0 : i32
    %c0_i32_0 = arith.constant 0 : i32
    %c0_i32_1 = arith.constant 0 : i32
    return %3, %c0_i32, %c0_i32_0 : i32, i32, i32
  }
  func.func @transform_20(%arg0: i32, %arg1: memref<32xi32, #tpu.memory_space<smem>>) -> (i32, i32, i32) {
    %c32_i32 = arith.constant 32 : i32
    %0 = arith.muli %arg0, %c32_i32 : i32
    %c20_i32 = arith.constant 20 : i32
    %1 = arith.addi %0, %c20_i32 : i32
    %2 = arith.index_cast %1 : i32 to index
    %3 = memref.load %arg1[%2] : memref<32xi32, #tpu.memory_space<smem>>
    %c0_i32 = arith.constant 0 : i32
    %c0_i32_0 = arith.constant 0 : i32
    %c0_i32_1 = arith.constant 0 : i32
    return %3, %c0_i32, %c0_i32_0 : i32, i32, i32
  }
  func.func @transform_21(%arg0: i32, %arg1: memref<32xi32, #tpu.memory_space<smem>>) -> (i32, i32, i32) {
    %c32_i32 = arith.constant 32 : i32
    %0 = arith.muli %arg0, %c32_i32 : i32
    %c21_i32 = arith.constant 21 : i32
    %1 = arith.addi %0, %c21_i32 : i32
    %2 = arith.index_cast %1 : i32 to index
    %3 = memref.load %arg1[%2] : memref<32xi32, #tpu.memory_space<smem>>
    %c0_i32 = arith.constant 0 : i32
    %c0_i32_0 = arith.constant 0 : i32
    %c0_i32_1 = arith.constant 0 : i32
    return %3, %c0_i32, %c0_i32_0 : i32, i32, i32
  }
  func.func @transform_22(%arg0: i32, %arg1: memref<32xi32, #tpu.memory_space<smem>>) -> (i32, i32, i32) {
    %c32_i32 = arith.constant 32 : i32
    %0 = arith.muli %arg0, %c32_i32 : i32
    %c22_i32 = arith.constant 22 : i32
    %1 = arith.addi %0, %c22_i32 : i32
    %2 = arith.index_cast %1 : i32 to index
    %3 = memref.load %arg1[%2] : memref<32xi32, #tpu.memory_space<smem>>
    %c0_i32 = arith.constant 0 : i32
    %c0_i32_0 = arith.constant 0 : i32
    %c0_i32_1 = arith.constant 0 : i32
    return %3, %c0_i32, %c0_i32_0 : i32, i32, i32
  }
  func.func @transform_23(%arg0: i32, %arg1: memref<32xi32, #tpu.memory_space<smem>>) -> (i32, i32, i32) {
    %c32_i32 = arith.constant 32 : i32
    %0 = arith.muli %arg0, %c32_i32 : i32
    %c23_i32 = arith.constant 23 : i32
    %1 = arith.addi %0, %c23_i32 : i32
    %2 = arith.index_cast %1 : i32 to index
    %3 = memref.load %arg1[%2] : memref<32xi32, #tpu.memory_space<smem>>
    %c0_i32 = arith.constant 0 : i32
    %c0_i32_0 = arith.constant 0 : i32
    %c0_i32_1 = arith.constant 0 : i32
    return %3, %c0_i32, %c0_i32_0 : i32, i32, i32
  }
  func.func @transform_24(%arg0: i32, %arg1: memref<32xi32, #tpu.memory_space<smem>>) -> (i32, i32, i32) {
    %c32_i32 = arith.constant 32 : i32
    %0 = arith.muli %arg0, %c32_i32 : i32
    %c24_i32 = arith.constant 24 : i32
    %1 = arith.addi %0, %c24_i32 : i32
    %2 = arith.index_cast %1 : i32 to index
    %3 = memref.load %arg1[%2] : memref<32xi32, #tpu.memory_space<smem>>
    %c0_i32 = arith.constant 0 : i32
    %c0_i32_0 = arith.constant 0 : i32
    %c0_i32_1 = arith.constant 0 : i32
    return %3, %c0_i32, %c0_i32_0 : i32, i32, i32
  }
  func.func @transform_25(%arg0: i32, %arg1: memref<32xi32, #tpu.memory_space<smem>>) -> (i32, i32, i32) {
    %c32_i32 = arith.constant 32 : i32
    %0 = arith.muli %arg0, %c32_i32 : i32
    %c25_i32 = arith.constant 25 : i32
    %1 = arith.addi %0, %c25_i32 : i32
    %2 = arith.index_cast %1 : i32 to index
    %3 = memref.load %arg1[%2] : memref<32xi32, #tpu.memory_space<smem>>
    %c0_i32 = arith.constant 0 : i32
    %c0_i32_0 = arith.constant 0 : i32
    %c0_i32_1 = arith.constant 0 : i32
    return %3, %c0_i32, %c0_i32_0 : i32, i32, i32
  }
  func.func @transform_26(%arg0: i32, %arg1: memref<32xi32, #tpu.memory_space<smem>>) -> (i32, i32, i32) {
    %c32_i32 = arith.constant 32 : i32
    %0 = arith.muli %arg0, %c32_i32 : i32
    %c26_i32 = arith.constant 26 : i32
    %1 = arith.addi %0, %c26_i32 : i32
    %2 = arith.index_cast %1 : i32 to index
    %3 = memref.load %arg1[%2] : memref<32xi32, #tpu.memory_space<smem>>
    %c0_i32 = arith.constant 0 : i32
    %c0_i32_0 = arith.constant 0 : i32
    %c0_i32_1 = arith.constant 0 : i32
    return %3, %c0_i32, %c0_i32_0 : i32, i32, i32
  }
  func.func @transform_27(%arg0: i32, %arg1: memref<32xi32, #tpu.memory_space<smem>>) -> (i32, i32, i32) {
    %c32_i32 = arith.constant 32 : i32
    %0 = arith.muli %arg0, %c32_i32 : i32
    %c27_i32 = arith.constant 27 : i32
    %1 = arith.addi %0, %c27_i32 : i32
    %2 = arith.index_cast %1 : i32 to index
    %3 = memref.load %arg1[%2] : memref<32xi32, #tpu.memory_space<smem>>
    %c0_i32 = arith.constant 0 : i32
    %c0_i32_0 = arith.constant 0 : i32
    %c0_i32_1 = arith.constant 0 : i32
    return %3, %c0_i32, %c0_i32_0 : i32, i32, i32
  }
  func.func @transform_28(%arg0: i32, %arg1: memref<32xi32, #tpu.memory_space<smem>>) -> (i32, i32, i32) {
    %c32_i32 = arith.constant 32 : i32
    %0 = arith.muli %arg0, %c32_i32 : i32
    %c28_i32 = arith.constant 28 : i32
    %1 = arith.addi %0, %c28_i32 : i32
    %2 = arith.index_cast %1 : i32 to index
    %3 = memref.load %arg1[%2] : memref<32xi32, #tpu.memory_space<smem>>
    %c0_i32 = arith.constant 0 : i32
    %c0_i32_0 = arith.constant 0 : i32
    %c0_i32_1 = arith.constant 0 : i32
    return %3, %c0_i32, %c0_i32_0 : i32, i32, i32
  }
  func.func @transform_29(%arg0: i32, %arg1: memref<32xi32, #tpu.memory_space<smem>>) -> (i32, i32, i32) {
    %c32_i32 = arith.constant 32 : i32
    %0 = arith.muli %arg0, %c32_i32 : i32
    %c29_i32 = arith.constant 29 : i32
    %1 = arith.addi %0, %c29_i32 : i32
    %2 = arith.index_cast %1 : i32 to index
    %3 = memref.load %arg1[%2] : memref<32xi32, #tpu.memory_space<smem>>
    %c0_i32 = arith.constant 0 : i32
    %c0_i32_0 = arith.constant 0 : i32
    %c0_i32_1 = arith.constant 0 : i32
    return %3, %c0_i32, %c0_i32_0 : i32, i32, i32
  }
  func.func @transform_30(%arg0: i32, %arg1: memref<32xi32, #tpu.memory_space<smem>>) -> (i32, i32, i32) {
    %c32_i32 = arith.constant 32 : i32
    %0 = arith.muli %arg0, %c32_i32 : i32
    %c30_i32 = arith.constant 30 : i32
    %1 = arith.addi %0, %c30_i32 : i32
    %2 = arith.index_cast %1 : i32 to index
    %3 = memref.load %arg1[%2] : memref<32xi32, #tpu.memory_space<smem>>
    %c0_i32 = arith.constant 0 : i32
    %c0_i32_0 = arith.constant 0 : i32
    %c0_i32_1 = arith.constant 0 : i32
    return %3, %c0_i32, %c0_i32_0 : i32, i32, i32
  }
  func.func @transform_31(%arg0: i32, %arg1: memref<32xi32, #tpu.memory_space<smem>>) -> (i32, i32, i32) {
    %c32_i32 = arith.constant 32 : i32
    %0 = arith.muli %arg0, %c32_i32 : i32
    %c31_i32 = arith.constant 31 : i32
    %1 = arith.addi %0, %c31_i32 : i32
    %2 = arith.index_cast %1 : i32 to index
    %3 = memref.load %arg1[%2] : memref<32xi32, #tpu.memory_space<smem>>
    %c0_i32 = arith.constant 0 : i32
    %c0_i32_0 = arith.constant 0 : i32
    %c0_i32_1 = arith.constant 0 : i32
    return %3, %c0_i32, %c0_i32_0 : i32, i32, i32
  }
  func.func @transform_32(%arg0: i32, %arg1: memref<32xi32, #tpu.memory_space<smem>>) -> (i32, i32) {
    %c0_i32 = arith.constant 0 : i32
    %c0_i32_0 = arith.constant 0 : i32
    return %arg0, %c0_i32 : i32, i32
  }
}

</mosaic_0001>

<bundles_post_ra>
// kernel: tpu_custom_call.1
= control target key start
LH: loop header
LB: loop body
LE: loop exit
PB: predicated region body
PF: predicated region fallthrough
CT: control target
= control target key end

     0   :  { %s1881_s6 = smov 1   ;;  %s1882_s10 = smov 2   ;;  %s2335_s0 = inlined_call_operand.smem [shape: u32[34], index: -1, kind: input, shape index: {}] }
   0x1   :  { %s1927_s5 = sld [smem:[%s2335_s0]]   ;;  %s1883_s14 = smov 3  }
   0x2   :  { %s1932_s9 = sld [smem:[%s2335_s0 + %s1881_s6]]   ;;  %s1884_s18 = smov 4  }
   0x3   :  { %s1937_s13 = sld [smem:[%s2335_s0 + %s1882_s10]]   ;;  %s1885_s22 = smov 5  }
   0x4   :  { %s1942_s17 = sld [smem:[%s2335_s0 + %s1883_s14]]   ;;  %s1886_s26 = smov 6  }
   0x5   :  { %s1947_s21 = sld [smem:[%s2335_s0 + %s1884_s18]]   ;;  %s1887_s30 = smov 7  }
   0x6   :  { %s1952_s25 = sld [smem:[%s2335_s0 + %s1885_s22]]   ;;  %s1888_s4 = smov 8  }
   0x7   :  { %s1957_s29 = sld [smem:[%s2335_s0 + %s1886_s26]]   ;;  %s1889_s10 = smov 9  }
   0x8   :  { %s1962_s3 = sld [smem:[%s2335_s0 + %s1887_s30]]   ;;  %s1890_s15 = smov 10  }
   0x9   :  { %s1967_s8 = sld [smem:[%s2335_s0 + %s1888_s4]]   ;;  %s1891_s20 = smov 11  }
   0xa   :  { %s1972_s14 = sld [smem:[%s2335_s0 + %s1889_s10]]   ;;  %s1892_s26 = smov 12  }
   0xb   :  { %s1977_s19 = sld [smem:[%s2335_s0 + %s1890_s15]]   ;;  %s1893_s1 = smov 13  }
   0xc   :  { %s1982_s24 = sld [smem:[%s2335_s0 + %s1891_s20]]   ;;  %s1894_s7 = smov 14  }
   0xd   :  { %s1987_s30 = sld [smem:[%s2335_s0 + %s1892_s26]]   ;;  %s1895_s15 = smov 15  }
   0xe   :  { %s1992_s6 = sld [smem:[%s2335_s0 + %s1893_s1]]   ;;  %s1896_s22 = smov 16  }
   0xf   :  { %s1997_s12 = sld [smem:[%s2335_s0 + %s1894_s7]]   ;;  %s1897_s28 = smov 17  }
  0x10   :  { %s2002_s20 = sld [smem:[%s2335_s0 + %s1895_s15]]   ;;  %s1898_s7 = smov 18  }
  0x11   :  { %s2007_s27 = sld [smem:[%s2335_s0 + %s1896_s22]]   ;;  %s1899_s15 = smov 19  }
  0x12   :  { %s2012_s4 = sld [smem:[%s2335_s0 + %s1897_s28]]   ;;  %s1900_s22 = smov 20  }
  0x13   :  { %s1901_s28 = smov 21  }
  0x15   :  { %2337 = sst [smem:[#allocation8_spill]] %s1997_s12 }
  0x16   :  { %2338 = sst [smem:[#allocation9_spill]] %s2002_s20 }
  0x17   :  { %2339 = sst [smem:[#allocation10_spill]] %s2007_s27 }
  0x18   :  { %2340 = sst [smem:[#allocation11_spill]] %s2012_s4 }
  0x19   :  { %s2017_s12 = sld [smem:[%s2335_s0 + %s1898_s7]]   ;;  %s1902_s7 = smov 22  }
  0x1a   :  { %s2022_s20 = sld [smem:[%s2335_s0 + %s1899_s15]]   ;;  %s1903_s15 = smov 23  }
  0x1b   :  { %s2027_s27 = sld [smem:[%s2335_s0 + %s1900_s22]]   ;;  %s1904_s22 = smov 24  }
  0x1c   :  { %s2032_s4 = sld [smem:[%s2335_s0 + %s1901_s28]]   ;;  %s1905_s28 = smov 25  }
  0x1d   :  { %s2047_s1 = sld [smem:[%s2335_s0 + %s1904_s22]]   ;;  %s1908_s22 = smov 28  }
  0x1e   :  { %s2052_s10 = sld [smem:[%s2335_s0 + %s1905_s28]]  }
  0x1f   :  { %2341 = sst [smem:[#allocation12_spill]] %s2017_s12 }
  0x20   :  { %2342 = sst [smem:[#allocation13_spill]] %s2022_s20 }
  0x21   :  { %2343 = sst [smem:[#allocation14_spill]] %s2027_s27 }
  0x22   :  { %2344 = sst [smem:[#allocation15_spill]] %s2032_s4  ;;  %s1909_s4 = smov 29  }
  0x23   :  { %s2037_s12 = sld [smem:[%s2335_s0 + %s1902_s7]]   ;;  %s1906_s7 = smov 26  }
  0x24   :  { %s2042_s20 = sld [smem:[%s2335_s0 + %s1903_s15]]   ;;  %s1907_s15 = smov 27  }
  0x25   :  { %2347 = sst [smem:[#allocation18_spill]] %s2047_s1  ;;  %s72_s1 = sshll.u32 %s1927_s5, 4  ;;  %s73_s1 = int_to_ptr.vmem [resolvable:$true] %s72_s1 }
  0x26   :  { %2348 = sst [smem:[#allocation19_spill]] %s2052_s10  ;;  %p1850_p1 = scmp.lt.s32.totalorder %s73_s1, %s73_s1 }
  0x27   :  { %s2057_s16 = sld [smem:[%s2335_s0 + %s1906_s7]]   ;;  %s1845_s7 = scalar_lea.vmem %s73_s1, 16 }
  0x28   :  { %s2062_s23 = sld [smem:[%s2335_s0 + %s1907_s15]]   ;;  %p1846_p0 = scmp.ne.s32.totalorder %s73_s1, %s1845_s7 }
  0x29   :  { %2345 = sst [smem:[#allocation16_spill]] %s2037_s12  ;;  %s1910_s12 = smov 30  }
  0x2a   :  { %2346 = sst [smem:[#allocation17_spill]] %s2042_s20  ;;  %s1911_s20 = smov 31  }
  0x2b   :  { %s2067_s27 = sld [smem:[%s2335_s0 + %s1908_s22]]   ;;  %s1912_s22 = smov 32  }
  0x2c   :  { %s2072_s10 = sld [smem:[%s2335_s0 + %s1909_s4]]   ;;  %s1913_s4 = smov 33  }
  0x2d   :  { %2349 = sst [smem:[#allocation20_spill]] %s2057_s16  ;;  %p1851_p2 = scmp.lt.s32.totalorder %s1845_s7, %s1845_s7 }
  0x2e   :  { %2350 = sst [smem:[#allocation21_spill]] %s2062_s23 }
  0x2f   :  { %s2077_s16 = sld [smem:[%s2335_s0 + %s1910_s12]]   ;;  %p1852_p3 = por %p1851_p2, %p1850_p1 }
  0x30   :  { %s2082_s23 = sld [smem:[%s2335_s0 + %s1911_s20]]  }
  0x31   :  { %2351 = sst [smem:[#allocation22_spill]] %s2067_s27  ;;  %p1853_p4 = pnand %p1852_p3, %p1846_p0 }
  0x32   :  { %2352 = sst [smem:[#allocation23_spill]] %s2072_s10 }
  0x33   :  { %s2088_s28 = sld [smem:[%s2335_s0 + %s1912_s22]]  }
  0x34   :  { %s2093_s12 = sld [smem:[%s2335_s0 + %s1913_s4]]  }
  0x35   :  { %1856 = shalt.err (!%p1853_p4)  }
  0x36   :  { %s1914_s5 = smov [#allocation3]  }
  0x37   :  { %75 = dma.vmem_to_smem %s73_s1, 16, %s1914_s5, [#allocation2] }
  0x38   :  { %1877 = dma.done.wait [#allocation2], 16 }
  0x39   :  { %1878 = vsyncadd [#allocation2], 4294967280 }
  0x3a   :  { %77 = sfence }
  0x3b   :  { %78 = vsyncpa [#allocation5], 0  ;;  %s621_s27 = sld [smem:[#allocation3]]  ;;  %v1915_v0 = vmov 1966171168   ;;  %v949_v2 = vlaneseq  ;;  %vm1214_vm0 = vcmask 1040384  }
  0x3c   :  { %s1746_s11 = sld [smem:[#allocation3 + $0x1]]  ;;  %v947_v1 = vunpack.c.l.s4 %v1915_v0  ;;  %vm1215_vm1 = vsmask.f32 256  ;;  %vm1224_vm3 = vsmask.f32 1280  ;;  %vm1223_vm4 = vcmask 1041408  }
  0x3d   :  { %s1747_s0 = sld [smem:[#allocation3 + $0x2]]  ;;  %v950_v4 = vshrl.u32 %v949_v2, 7  ;;  %vm2108_vm2 = vmand %vm1214_vm0, %vm1215_vm1  ;;  %vm1232_vm6 = vcmask 1042432   ;;  %vm1233_vm7 = vsmask.f32 2304  ;;  %vm1241_vm9 = vcmask 1043456  }
  0x3e   :  { %s1748_s10 = sld [smem:[#allocation3 + $0x3]]  ;;  %v948_v3 = vunpack.c.0.s8 %v947_v1  ;;  %vm2128_vm5 = vmand %vm1223_vm4, %vm1224_vm3  ;;  %vm1242_vm10 = vsmask.f32 3328  ;;  %vm1251_vm12 = vsmask.f32 4352  ;;  %vm2336_vm13 = vcmask 1044480  }
  0x3f   :  { %s1749_s20 = sld [smem:[#allocation3 + $0x4]]  ;;  %vm2151_vm8 = vmand %vm1232_vm6, %vm1233_vm7  ;;  %vm1260_vm14 = vsmask.f32 5376  ;;  %vm1259_vm1 = vcmask 1045504   ;;  %vm1268_vm7 = vcmask 1046528  }
  0x40   :  { %s1750_s15 = sld [smem:[#allocation3 + $0x5]]  ;;  %v2099_v5 = vsub.s32 %v948_v3, %v950_v4  ;;  %vm2168_vm11 = vmand %vm1241_vm9, %vm1242_vm10  ;;  %vm1269_vm10 = vsmask.f32 6400 }
  0x41   :  { %p622_p5 = scmp.lt.s32.totalorder %s621_s27, 255  ;;  %s2095_s18 = sld [smem:[#allocation3 + $0x6]]  ;;  %vm2189_vm15 = vmand %vm2336_vm13, %vm1251_vm12 }
  0x42   :  { %p630_p6 = scmp.lt.s32.totalorder %s1746_s11, 255  ;;  %s2097_s1 = sld [smem:[#allocation3 + $0x7]]  ;;  %vm2206_vm3 = vmand %vm1259_vm1, %vm1260_vm14  ;;  %vm1277_vm14 = vcmask 1047552  }
  0x43   :  { %s2387_s27 = smov (!%p622_p5, %s621_s27), 255  ;;  %p639_p7 = scmp.lt.s32.totalorder %s1747_s0, 255  ;;  %vm2230_vm12 = vmand %vm1268_vm7, %vm1269_vm10 }
  0x44   :  { %s2389_s11 = smov (!%p630_p6, %s1746_s11), 255  ;;  %s624_s22 = scalar_lea.vmem %s1932_s9, %s2387_s27 }
  0x45   :  { %s632_s26 = scalar_lea.vmem %s1937_s13, %s2389_s11  ;;  %p648_p8 = scmp.lt.s32.totalorder %s1748_s10, 255  ;;  %v906_v10 = vld [vmem:[%s624_s22] sm:$0x1] }
  0x46   :  { %s2391_s0 = smov (!%p639_p7, %s1747_s0), 255  ;;  %v1777_v6 = vld.sshfl [vmem:[%s632_s26] sm:$0x1 pattern:$0x75316420]  ;;  %p657_p9 = scmp.lt.s32.totalorder %s1749_s20, 255 }
  0x47   :  { %s2393_s10 = smov (!%p648_p8, %s1748_s10), 255  ;;  %v952_v7 = vrot.slane %v1777_v6, %v2099_v5  ;;  %s641_s4 = scalar_lea.vmem %s1942_s17, %s2391_s0 }
  0x48   :  { %s650_s2 = scalar_lea.vmem %s1947_s21, %s2393_s10  ;;  %p666_p10 = scmp.lt.s32.totalorder %s1750_s15, 255  ;;  %v1837_v11 = vld [vmem:[%s641_s4] ss:$0 sps:$4 sm:$0x11]  }
  0x49   :  { %s2395_s20 = smov (!%p657_p9, %s1749_s20), 255  ;;  %v1778_v8 = vld.sshfl [vmem:[%s650_s2] sm:$0x1 pattern:$0x75316420]  ;;  %v954_v9 = vshll.u32 %v952_v7, 16  ;;  %v965_v15 = vrot.slane %v1837_v11, %v2099_v5 }
  0x4a   :  { %s2397_s15 = smov (!%p666_p10, %s1750_s15), 255  ;;  %v987_v12 = vrot.slane %v1778_v8, %v2099_v5  ;;  %s659_s9 = scalar_lea.vmem %s1952_s25, %s2395_s20 }
  0x4b   :  { %p675_p11 = scmp.lt.s32.totalorder %s2095_s18, 255  ;;  %s668_s13 = scalar_lea.vmem %s1957_s29, %s2397_s15  ;;  %v1779_v14 = vld.sshfl [vmem:[%s659_s9] sm:$0x1 pattern:$0x75316420]  ;;  %v1217_v18 = vsel %vm2108_vm2, %v906_v10, %v954_v9  ;;  %v972_v19 = vrot.slane %v965_v15, %v2099_v5 }
  0x4c   :  { %p684_p12 = scmp.lt.s32.totalorder %s2097_s1, 255  ;;  %v989_v16 = vshll.u32 %v987_v12, 16  ;;  %v1780_v17 = vld.sshfl [vmem:[%s668_s13] sm:$0x1 pattern:$0x75316420]  ;;  %v1001_v20 = vcombine.low %v1779_v14, %v1779_v14 }
  0x4d   :  { %s2399_s18 = smov (!%p675_p11, %s2095_s18), 255  ;;  %v1023_v21 = vrot.slane %v1780_v17, %v2099_v5  ;;  %s1753_s21 = sld [smem:[#allocation3 + $0x8]]  ;;  %v1221_v24 = vsel %vm1214_vm0, %v1217_v18, %v972_v19 }
  0x4e   :  { %s2401_s1 = smov (!%p684_p12, %s2097_s1), 255  ;;  %s677_s17 = scalar_lea.vmem %s1962_s3, %s2399_s18  ;;  %v991_v22 = vrot.slane %v989_v16, 7  ;;  %v1008_v27 = vrot.slane %v1001_v20, %v2099_v5 }
  0x4f   :  { %s686_s25 = scalar_lea.vmem %s1967_s8, %s2401_s1  ;;  %s1754_s29 = sld [smem:[#allocation3 + $0x9]]  ;;  %v1025_v23 = vshll.u32 %v1023_v21, 16  ;;  %v1838_v28 = vld [vmem:[%s677_s17] ss:$0 sps:$4 sm:$0x11]  }
  0x50   :  { %s2132_s7 = sld [smem:[#allocation3 + $0xa]]  ;;  %v1781_v26 = vld.sshfl [vmem:[%s686_s25] sm:$0x1 pattern:$0x75316420]  ;;  %v1226_v30 = vsel %vm2128_vm5, %v1221_v24, %v991_v22  ;;  %v1037_v31 = vrot.slane %v1838_v28, %v2099_v5 }
  0x51   :  { %s2134_s5 = sld [smem:[#allocation3 + $0xb]]  ;;  %v1060_v29 = vrot.slane %v1781_v26, %v2099_v5  ;;  %v1027_v32 = vrot.slane %v1025_v23, 6  ;;  %v1230_v34 = vsel %vm1223_vm4, %v1226_v30, %v1008_v27 }
  0x52   :  { %s2137_s3 = sld [smem:[#allocation3 + $0xc]]  ;;  %v1038_v33 = vcombine.low %v1037_v31, %v1037_v31 }
  0x53   :  { %s2142_s8 = sld [smem:[#allocation3 + $0xd]]  ;;  %p693_p13 = scmp.lt.s32.totalorder %s1753_s21, 255  ;;  %v1062_v36 = vshll.u32 %v1060_v29, 16  ;;  %v1235_v38 = vsel %vm2151_vm8, %v1230_v34, %v1027_v32 }
  0x54   :  { %s2145_s27 = sld [smem:[#allocation3 + $0xe]]  ;;  %v1045_v37 = vrot.slane %v1038_v33, %v2099_v5 }
  0x55   :  { %p702_p0 = scmp.lt.s32.totalorder %s1754_s29, 255  ;;  %s2147_s11 = sld [smem:[#allocation3 + $0xf]]  ;;  %v1064_v41 = vrot.slane %v1062_v36, 5 }
  0x56   :  { %s2403_s21 = smov (!%p693_p13, %s1753_s21), 255  ;;  %p711_p1 = scmp.lt.s32.totalorder %s2132_s7, 255  ;;  %v1239_v44 = vsel %vm1232_vm6, %v1235_v38, %v1045_v37 }
  0x57   :  { %s2405_s29 = smov (!%p702_p0, %s1754_s29), 255  ;;  %s695_s0 = scalar_lea.vmem %s1972_s14, %s2403_s21  ;;  %v1244_v49 = vsel %vm2168_vm11, %v1239_v44, %v1064_v41 }
  0x58   :  { %s704_s10 = scalar_lea.vmem %s1977_s19, %s2405_s29  ;;  %p720_p2 = scmp.lt.s32.totalorder %s2134_s5, 255  ;;  %v1782_v39 = vld.sshfl [vmem:[%s695_s0] sm:$0x1 pattern:$0x75316420] }
  0x59   :  { %s2407_s7 = smov (!%p711_p1, %s2132_s7), 255  ;;  %v1783_v40 = vld.sshfl [vmem:[%s704_s10] sm:$0x1 pattern:$0x75316420]  ;;  %v1080_v42 = vrot.slane %v1782_v39, %v2099_v5  ;;  %p729_p3 = scmp.lt.s32.totalorder %s2137_s3, 255 }
  0x5a   :  { %s2409_s5 = smov (!%p720_p2, %s2134_s5), 255  ;;  %v1096_v43 = vrot.slane %v1783_v40, %v2099_v5  ;;  %s713_s14 = scalar_lea.vmem %s1982_s24, %s2407_s7 }
  0x5b   :  { %s722_s19 = scalar_lea.vmem %s1987_s30, %s2409_s5  ;;  %s2361_s20 = sld [smem:[#allocation8_spill]]  ;;  %v1081_v46 = vcombine.low %v1080_v42, %v1080_v42  ;;  %v1839_v50 = vld [vmem:[%s713_s14] ss:$0 sps:$4 sm:$0x11]  }
  0x5c   :  { %p738_p4 = scmp.lt.s32.totalorder %s2142_s8, 255  ;;  %v1098_v47 = vshll.u32 %v1096_v43, 16  ;;  %s2411_s3 = smov (!%p729_p3, %s2137_s3), 255  ;;  %v1110_v54 = vrot.slane %v1839_v50, %v2099_v5 }
  0x5d   :  { %v1784_v48 = vld.sshfl [vmem:[%s722_s19] sm:$0x1 pattern:$0x75316420]  ;;  %s731_s24 = scalar_lea.vmem %s1992_s6, %s2411_s3  ;;  %p747_p5 = scmp.lt.s32.totalorder %s2145_s27, 255  ;;  %v1248_v56 = vsel %vm1241_vm9, %v1244_v49, %v1081_v46 }
  0x5e   :  { %s2413_s8 = smov (!%p738_p4, %s2142_s8), 255  ;;  %v1133_v51 = vrot.slane %v1784_v48, %v2099_v5  ;;  %v1100_v52 = vrot.slane %v1098_v47, 4  ;;  %s2362_s30 = sld [smem:[#allocation9_spill]]  ;;  %v1117_v60 = vrot.slane %v1110_v54, %v2099_v5 }
  0x5f   :  { %p756_p6 = scmp.lt.s32.totalorder %s2147_s11, 255  ;;  %v1785_v53 = vld.sshfl [vmem:[%s731_s24] sm:$0x1 pattern:$0x75316420]  ;;  %s2363_s18 = sld [smem:[#allocation10_spill]] }
  0x60   :  { %v1135_v55 = vshll.u32 %v1133_v51, 16  ;;  %s2415_s27 = smov (!%p747_p5, %s2145_s27), 255  ;;  %v1147_v59 = vcombine.low %v1785_v53, %v1785_v53  ;;  %s2198_s1 = sld [smem:[#allocation3 + $0x10]]  ;;  %v1253_v0 = vsel %vm2189_vm15, %v1248_v56, %v1100_v52  ;;  %v1118_v1 = vcombine.low %v1117_v60, %v1117_v60 }
  0x61   :  { %s740_s15 = scalar_lea.vmem %s2361_s20, %s2413_s8  ;;  %s2417_s11 = smov (!%p756_p6, %s2147_s11), 255 }
  0x62   :  { %v1786_v58 = vld.sshfl [vmem:[%s740_s15] sm:$0x1 pattern:$0x75316420]  ;;  %v1137_v62 = vrot.slane %v1135_v55, 3  ;;  %v1154_v63 = vrot.slane %v1147_v59, %v2099_v5  ;;  %s1762_s26 = sld [smem:[#allocation3 + $0x11]]  ;;  %v1257_v9 = vsel %vm2336_vm13, %v1253_v0, %v1118_v1 }
  0x63   :  { %v1170_v61 = vrot.slane %v1786_v58, %v2099_v5  ;;  %s2210_s4 = sld [smem:[#allocation3 + $0x12]]  ;;  %vm1278_vm13 = vsmask.f32 7424 }
  0x64   :  { %s749_s6 = scalar_lea.vmem %s2362_s30, %s2415_s27  ;;  %s2212_s2 = sld [smem:[#allocation3 + $0x13]]  ;;  %v1155_v6 = vcombine.low %v1154_v63, %v1154_v63  ;;  %v1262_v10 = vsel %vm2206_vm3, %v1257_v9, %v1137_v62  ;;  %vm2245_vm10 = vmand %vm1277_vm14, %vm1278_vm13 }
  0x65   :  { %s758_s22 = scalar_lea.vmem %s2363_s18, %s2417_s11  ;;  %v1172_v2 = vshll.u32 %v1170_v61, 16  ;;  %v1840_v7 = vld [vmem:[%s749_s6] ss:$0 sps:$4 sm:$0x11]   ;;  %s2216_s9 = sld [smem:[#allocation3 + $0x14]] }
  0x66   :  { %v1787_v4 = vld.sshfl [vmem:[%s758_s22] sm:$0x1 pattern:$0x75316420]  ;;  %s2220_s13 = sld [smem:[#allocation3 + $0x15]]  ;;  %v1184_v11 = vrot.slane %v1840_v7, %v2099_v5  ;;  %p765_p7 = scmp.lt.s32.totalorder %s2198_s1, 255  ;;  %v1266_v16 = vsel %vm1259_vm1, %v1262_v10, %v1155_v6 }
  0x67   :  { %v1208_v8 = vrot.slane %v1787_v4, %v2099_v5  ;;  %s2368_s17 = sld [smem:[#allocation11_spill]]  ;;  %v1174_v12 = vrot.slane %v1172_v2, 2 }
  0x68   :  { %s2224_s21 = sld [smem:[#allocation3 + $0x16]]  ;;  %p774_p8 = scmp.lt.s32.totalorder %s1762_s26, 255  ;;  %v1185_v15 = vcombine.low %v1184_v11, %v1184_v11 }
  0x69   :  { %s2369_s25 = sld [smem:[#allocation12_spill]]  ;;  %v1210_v14 = vshll.u32 %v1208_v8, 16  ;;  %s2419_s1 = smov (!%p765_p7, %s2198_s1), 255  ;;  %v1271_v20 = vsel %vm2230_vm12, %v1266_v16, %v1174_v12 }
  0x6a   :  { %s2226_s29 = sld [smem:[#allocation3 + $0x17]]  ;;  %s2421_s26 = smov (!%p774_p8, %s1762_s26), 255  ;;  %v1192_v18 = vrot.slane %v1185_v15, %v2099_v5 }
  0x6b   :  { %s2372_s7 = sld [smem:[#allocation13_spill]]  ;;  %p783_p9 = scmp.lt.s32.totalorder %s2210_s4, 255  ;;  %v1212_v19 = vrot.slane %v1210_v14, 1 }
  0x6c   :  { %s2373_s3 = sld [smem:[#allocation14_spill]]  ;;  %p792_p10 = scmp.lt.s32.totalorder %s2212_s2, 255  ;;  %v1193_v21 = vcombine.low %v1192_v18, %v1192_v18 }
  0x6d   :  { %s767_s5 = scalar_lea.vmem %s2368_s17, %s2419_s1  ;;  %s2423_s4 = smov (!%p783_p9, %s2210_s4), 255 }
  0x6e   :  { %s2425_s2 = smov (!%p792_p10, %s2212_s2), 255  ;;  %v1275_v24 = vsel %vm1268_vm7, %v1271_v20, %v1193_v21  ;;  %s2376_s11 = sld [smem:[#allocation15_spill]]  ;;  %v922_v32 = vld [vmem:[%s767_s5] sm:$0x1] }
  0x6f   :  { %s776_s8 = scalar_lea.vmem %s2369_s25, %s2421_s26  ;;  %p801_p11 = scmp.lt.s32.totalorder %s2216_s9, 255  ;;  %v1280_v27 = vsel %vm2245_vm10, %v1275_v24, %v1212_v19 }
  0x70   :  { %v1788_v23 = vld.sshfl [vmem:[%s776_s8] sm:$0x1 pattern:$0x75316420]  ;;  %s2377_s0 = sld [smem:[#allocation16_spill]]  ;;  %p810_p12 = scmp.lt.s32.totalorder %s2220_s13, 255  ;;  %v1593_v28 = vunpack.c.l.bf16 %v1280_v27  ;;  %v1594_v29 = vunpack.c.h.bf16 %v1280_v27 }
  0x71   :  { %v1295_v26 = vrot.slane %v1788_v23, %v2099_v5  ;;  %s785_s27 = scalar_lea.vmem %s2372_s7, %s2423_s4  ;;  %s2427_s9 = smov (!%p801_p11, %s2216_s9), 255 }
  0x72   :  { %s794_s10 = scalar_lea.vmem %s2373_s3, %s2425_s2  ;;  %s2429_s13 = smov (!%p810_p12, %s2220_s13), 255  ;;  %v1841_v33 = vld [vmem:[%s785_s27] ss:$0 sps:$4 sm:$0x11]   ;;  %1597 = vst [vmem:[#allocation4] sm:$0xff] %v1593_v28  ;;  %1598 = vst [vmem:[#allocation4 + $0x8] sm:$0xff] %v1594_v29 }
  0x73   :  { %v1789_v30 = vld.sshfl [vmem:[%s794_s10] sm:$0x1 pattern:$0x75316420]  ;;  %v1297_v31 = vshll.u32 %v1295_v26, 16  ;;  %s2378_s14 = sld [smem:[#allocation17_spill]]  ;;  %v1308_v37 = vrot.slane %v1841_v33, %v2099_v5 }
  0x74   :  { %v1330_v34 = vrot.slane %v1789_v30, %v2099_v5  ;;  %s803_s19 = scalar_lea.vmem %s2376_s11, %s2427_s9  ;;  %p819_p13 = scmp.lt.s32.totalorder %s2224_s21, 255 }
  0x75   :  { %s2379_s20 = sld [smem:[#allocation18_spill]]  ;;  %p828_p0 = scmp.lt.s32.totalorder %s2226_s29, 255  ;;  %v1790_v36 = vld.sshfl [vmem:[%s803_s19] sm:$0x1 pattern:$0x75316420]  ;;  %v1557_v40 = vsel %vm2108_vm2, %v922_v32, %v1297_v31  ;;  %v1315_v41 = vrot.slane %v1308_v37, %v2099_v5 }
  0x76   :  { %s812_s24 = scalar_lea.vmem %s2377_s0, %s2429_s13  ;;  %v1332_v38 = vshll.u32 %v1330_v34, 16  ;;  %s2431_s21 = smov (!%p819_p13, %s2224_s21), 255  ;;  %v1344_v42 = vcombine.low %v1790_v36, %v1790_v36 }
  0x77   :  { %v1791_v39 = vld.sshfl [vmem:[%s812_s24] sm:$0x1 pattern:$0x75316420]  ;;  %s2433_s29 = smov (!%p828_p0, %s2226_s29), 255  ;;  %s1769_s15 = sld [smem:[#allocation3 + $0x18]]  ;;  %v1560_v47 = vsel %vm1214_vm0, %v1557_v40, %v1315_v41 }
  0x78   :  { %v1366_v43 = vrot.slane %v1791_v39, %v2099_v5  ;;  %v1334_v44 = vrot.slane %v1332_v38, 7  ;;  %s1770_s6 = sld [smem:[#allocation3 + $0x19]]  ;;  %v1351_v13 = vrot.slane %v1344_v42, %v2099_v5  ;;  %vm2385_vm0 = vcmask 1044480  }
  0x79   :  { %s821_s30 = scalar_lea.vmem %s2378_s14, %s2431_s21  ;;  %s1771_s1 = sld [smem:[#allocation3 + $0x1a]] }
  0x7a   :  { %v1368_v46 = vshll.u32 %v1366_v43, 16  ;;  %s1772_s22 = sld [smem:[#allocation3 + $0x1b]]  ;;  %v1842_v49 = vld [vmem:[%s821_s30] ss:$0 sps:$4 sm:$0x11]   ;;  %v1562_v51 = vsel %vm2128_vm5, %v1560_v47, %v1334_v44 }
  0x7b   :  { %s830_s18 = scalar_lea.vmem %s2379_s20, %s2433_s29  ;;  %s2277_s26 = sld [smem:[#allocation3 + $0x1c]]  ;;  %v1380_v52 = vrot.slane %v1842_v49, %v2099_v5  ;;  %v1565_v55 = vsel %vm1223_vm4, %v1562_v51, %v1351_v13 }
  0x7c   :  { %v1792_v48 = vld.sshfl [vmem:[%s830_s18] sm:$0x1 pattern:$0x75316420]  ;;  %s2380_s4 = sld [smem:[#allocation19_spill]]  ;;  %v1370_v53 = vrot.slane %v1368_v46, 6 }
  0x7d   :  { %v1403_v50 = vrot.slane %v1792_v48, %v2099_v5  ;;  %s2282_s2 = sld [smem:[#allocation3 + $0x1d]]  ;;  %p837_p1 = scmp.lt.s32.totalorder %s1769_s15, 255  ;;  %v1381_v54 = vcombine.low %v1380_v52, %v1380_v52 }
  0x7e   :  { %s2381_s9 = sld [smem:[#allocation20_spill]]  ;;  %p846_p2 = scmp.lt.s32.totalorder %s1770_s6, 255  ;;  %v1567_v58 = vsel %vm2151_vm8, %v1565_v55, %v1370_v53 }
  0x7f   :  { %s2285_s13 = sld [smem:[#allocation3 + $0x1e]]  ;;  %s2435_s15 = smov (!%p837_p1, %s1769_s15), 255  ;;  %v1405_v56 = vshll.u32 %v1403_v50, 16  ;;  %v1388_v25 = vrot.slane %v1381_v54, %v2099_v5 }
  0x80   :  { %s2287_s17 = sld [smem:[#allocation3 + $0x1f]]  ;;  %s2437_s6 = smov (!%p846_p2, %s1770_s6), 255 }
  0x81   :  { %s2382_s21 = sld [smem:[#allocation21_spill]]  ;;  %p855_p3 = scmp.lt.s32.totalorder %s1771_s1, 255  ;;  %v1407_v61 = vrot.slane %v1405_v56, 5  ;;  %v1570_v0 = vsel %vm1232_vm6, %v1567_v58, %v1388_v25 }
  0x82   :  { %s2383_s25 = sld [smem:[#allocation22_spill]]  ;;  %s839_s29 = scalar_lea.vmem %s2380_s4, %s2435_s15 }
  0x83   :  { %p864_p4 = scmp.lt.s32.totalorder %s1772_s22, 255  ;;  %v1793_v59 = vld.sshfl [vmem:[%s839_s29] sm:$0x1 pattern:$0x75316420]  ;;  %s2439_s1 = smov (!%p855_p3, %s1771_s1), 255  ;;  %v1572_v4 = vsel %vm2168_vm11, %v1570_v0, %v1407_v61 }
  0x84   :  { %s848_s7 = scalar_lea.vmem %s2381_s9, %s2437_s6  ;;  %v1423_v62 = vrot.slane %v1793_v59, %v2099_v5  ;;  %s2384_s5 = sld [smem:[#allocation23_spill]] }
  0x85   :  { %v1794_v60 = vld.sshfl [vmem:[%s848_s7] sm:$0x1 pattern:$0x75316420]  ;;  %s2441_s22 = smov (!%p864_p4, %s1772_s22), 255  ;;  %p873_p5 = scmp.lt.s32.totalorder %s2277_s26, 255 }
  0x86   :  { %v1439_v63 = vrot.slane %v1794_v60, %v2099_v5  ;;  %p882_p6 = scmp.lt.s32.totalorder %s2282_s2, 255  ;;  %v1424_v35 = vcombine.low %v1423_v62, %v1423_v62  ;;  %p891_p7 = scmp.lt.s32.totalorder %s2285_s13, 255 }
  0x87   :  { %s857_s3 = scalar_lea.vmem %s2382_s21, %s2439_s1  ;;  %s2443_s26 = smov (!%p873_p5, %s2277_s26), 255 }
  0x88   :  { %s866_s8 = scalar_lea.vmem %s2383_s25, %s2441_s22  ;;  %v1441_v1 = vshll.u32 %v1439_v63, 16  ;;  %s2445_s2 = smov (!%p882_p6, %s2282_s2), 255  ;;  %v1843_v6 = vld [vmem:[%s857_s3] ss:$0 sps:$4 sm:$0x11]   ;;  %v1575_v12 = vsel %vm1241_vm9, %v1572_v4, %v1424_v35 }
  0x89   :  { %v1795_v2 = vld.sshfl [vmem:[%s866_s8] sm:$0x1 pattern:$0x75316420]  ;;  %s884_s11 = scalar_lea.vmem %s2077_s16, %s2445_s2  ;;  %p900_p8 = scmp.lt.s32.totalorder %s2287_s17, 255  ;;  %v1453_v10 = vrot.slane %v1843_v6, %v2099_v5 }
  0x8a   :  { %v1476_v7 = vrot.slane %v1795_v2, %v2099_v5  ;;  %s875_s27 = scalar_lea.vmem %s2384_s5, %s2443_s26  ;;  %v1443_v8 = vrot.slane %v1441_v1, 4  ;;  %s2447_s13 = smov (!%p891_p7, %s2285_s13), 255  ;;  %v1797_v45 = vld.sshfl [vmem:[%s884_s11] sm:$0x1 pattern:$0x75316420] }
  0x8b   :  { %v1796_v9 = vld.sshfl [vmem:[%s875_s27] sm:$0x1 pattern:$0x75316420]  ;;  %s2449_s17 = smov (!%p900_p8, %s2287_s17), 255  ;;  %v1460_v15 = vrot.slane %v1453_v10, %v2099_v5  ;;  %v1513_v16 = vrot.slane %v1797_v45, %v2099_v5  ;;  %s893_s0 = scalar_lea.vmem %s2082_s23, %s2447_s13 }
  0x8c   :  { %v1478_v11 = vshll.u32 %v1476_v7, 16  ;;  %v1490_v14 = vcombine.low %v1796_v9, %v1796_v9  ;;  %v1577_v20 = vsel %vm2189_vm15, %v1575_v12, %v1443_v8  ;;  %s902_s16 = scalar_lea.vmem %s2088_s28, %s2449_s17  ;;  %v1844_v24 = vld [vmem:[%s893_s0] ss:$0 sps:$4 sm:$0x11]   ;;  %s1916_s23 = smov [#allocation4]  }
  0x8d   :  { %v1461_v21 = vcombine.low %v1460_v15, %v1460_v15  ;;  %v1515_v23 = vshll.u32 %v1513_v16, 16  ;;  %v1798_v26 = vld.sshfl [vmem:[%s902_s16] sm:$0x1 pattern:$0x75316420]  ;;  %v1527_v28 = vrot.slane %v1844_v24, %v2099_v5  ;;  %s1606_s28 = sshll.u32 %s1916_s23, 4  ;;  %s1607_s28 = int_to_ptr.vmem [resolvable:$true] %s1606_s28 }
  0x8e   :  { %v1480_v18 = vrot.slane %v1478_v11, 3  ;;  %v1497_v19 = vrot.slane %v1490_v14, %v2099_v5  ;;  %v1551_v29 = vrot.slane %v1798_v26, %v2099_v5  ;;  %s1857_s10 = scalar_lea.vmem %s1607_s28, 512  ;;  %p1862_p10 = scmp.lt.s32.totalorder %s1607_s28, %s1607_s28 }
  0x8f   :  { %v1580_v30 = vsel %vm2385_vm0, %v1577_v20, %v1461_v21  ;;  %v1517_v31 = vrot.slane %v1515_v23, 2  ;;  %v1528_v33 = vcombine.low %v1527_v28, %v1527_v28  ;;  %p1858_p9 = scmp.ne.s32.totalorder %s1607_s28, %s1857_s10  ;;  %p1863_p11 = scmp.lt.s32.totalorder %s1857_s10, %s1857_s10 }
  0x90   :  { %v1498_v27 = vcombine.low %v1497_v19, %v1497_v19  ;;  %v1582_v32 = vsel %vm2206_vm3, %v1580_v30, %v1480_v18  ;;  %v1553_v34 = vshll.u32 %v1551_v29, 16 }
  0x91   :  { %v1535_v36 = vrot.slane %v1528_v33, %v2099_v5  ;;  %p1864_p12 = por %p1863_p11, %p1862_p10 }
  0x92   :  { %v1585_v57 = vsel %vm1259_vm1, %v1582_v32, %v1498_v27  ;;  %v1555_v37 = vrot.slane %v1553_v34, 1 }
  0x93   :  { %v1587_v38 = vsel %vm2230_vm12, %v1585_v57, %v1517_v31  ;;  %v1536_v39 = vcombine.low %v1535_v36, %v1535_v36  ;;  %p1865_p13 = pnand %p1864_p12, %p1858_p9 }
  0x95   :  { %v1590_v40 = vsel %vm1268_vm7, %v1587_v38, %v1536_v39 }
  0x96   :  { %v1592_v41 = vsel %vm2245_vm10, %v1590_v40, %v1555_v37 }
  0x97   :  { %v1595_v3 = vunpack.c.l.bf16 %v1592_v41  ;;  %v1596_v42 = vunpack.c.h.bf16 %v1592_v41 }
  0x99   :  { %1599 = vst [vmem:[#allocation4 + $0x10] sm:$0xff] %v1595_v3  ;;  %1600 = vst [vmem:[#allocation4 + $0x18] sm:$0xff] %v1596_v42 }
  0x9a   :  { %1868 = shalt.err (!%p1865_p13)
}
  0x9b   :  { %s1917_s14 = smov 128   ;;  %s1918_s19 = smov 8  }
  0x9c   :  { %1612 = dma.vmem_to_hbm [thread:$0]  %s1607_s28, 512, %s2093_s12, [#allocation5], %s1917_s14, %s1917_s14, %s1918_s19  }
  0x9d   :  { %1879 = dma.done.wait [#allocation5], 512  }
  0x9e   :  { %1880 = vsyncadd [#allocation5], 4294966784 }
  0x9f   :  { %1616 = vsyncpa [#allocation5], 1 }

</bundles_post_ra>
